<compile_context>
chip_gen: v6e
topology: v6e:2x2x1
jax: 0.10.0
libtpu: 0.0.40
codegen_flags: <defaults>
</compile_context>

<pallas_src>
import jax
import jax.numpy as jnp
from jax.experimental import pallas as pl
from jax.experimental.pallas import tpu as pltpu

D_IN = 16
D_OUT = 16
PAD = 128  # padded hidden width (lane-dense intermediates)


def ff_kernel(x_ref,
              w1_ref, b1_ref,
              w2_ref, b2_ref,
              w3_ref, b3_ref,
              w4_ref, b4_ref,
              o_ref):
    # x tile: (TB, 16) f32 -> bf16 for the MXU (cast in-register, no HBM cost).
    h = x_ref[...].astype(jnp.bfloat16)

    # Layer 1: (TB,16)@(16,128), f32 accumulate, f32 bias+ReLU epilogue.
    acc = jnp.dot(h, w1_ref[...], preferred_element_type=jnp.float32)
    acc = jnp.maximum(acc + b1_ref[...], 0.0)
    h = acc.astype(jnp.bfloat16)

    # Layer 2: (TB,128)@(128,128)
    acc = jnp.dot(h, w2_ref[...], preferred_element_type=jnp.float32)
    acc = jnp.maximum(acc + b2_ref[...], 0.0)
    h = acc.astype(jnp.bfloat16)

    # Layer 3: (TB,128)@(128,128)
    acc = jnp.dot(h, w3_ref[...], preferred_element_type=jnp.float32)
    acc = jnp.maximum(acc + b3_ref[...], 0.0)
    h = acc.astype(jnp.bfloat16)

    # Layer 4: (TB,128)@(128,16) -> narrow (16-lane) f32 output tile.
    acc = jnp.dot(h, w4_ref[...], preferred_element_type=jnp.float32)
    acc = jnp.maximum(acc + b4_ref[...], 0.0)

    o_ref[...] = acc.astype(o_ref.dtype)


def _round_up(n, m):
    return ((n + m - 1) // m) * m


def _cdiv(a, b):
    return (a + b - 1) // b


def prepare_params(params):
    """One-time padding + bf16 cast of the FF weights (hoisted out of forward).

    params: 4 tuples (W, b) with W (in, out) f32, b (1, out) f32.
    Returns padded bf16 weights / f32 biases:
      w1 (16,128), w2 (128,128), w3 (128,128), w4 (128,16); b1..b3 (1,128), b4 (1,16).
    Zero padding + zero bias padding keeps all padded hidden columns exactly 0
    through bias-add and ReLU, so results are bit-identical to the un-padded math.
    """
    pad_dims = [(D_IN, PAD), (PAD, PAD), (PAD, PAD), (PAD, D_OUT)]
    prepped = []
    for (w, b), (pi, po) in zip(params, pad_dims):
        fi, fo = w.shape
        wp = jnp.zeros((pi, po), jnp.bfloat16).at[:fi, :fo].set(w.astype(jnp.bfloat16))
        bp = jnp.zeros((1, po), jnp.float32).at[:, :fo].set(
            b.astype(jnp.float32).reshape(1, fo))
        prepped.append((wp, bp))
    return prepped


def _select_tb(B, tb):
    # Round to a multiple of 16 (bf16 sublane tile).  v7x-aware clamp: keep at
    # least 2 grid steps when possible so the "parallel" batch axis shards
    # across both TensorCores; harmless on single-TC v5e/v6e.
    TB = min(tb, _round_up(_cdiv(max(B, 1), 2), 16))
    return max(TB, 16)


def ff_forward(x, prepped_params, *, tb=2048):
    """x: (B, 16) f32.  prepped_params: output of prepare_params()."""
    B, d_in = x.shape
    assert d_in == D_IN

    TB = _select_tb(B, tb)
    Bp = _round_up(B, TB)

    # Only pad the batch dim (rows), and only when needed.  No lane padding.
    if Bp != B:
        xp = jnp.zeros((Bp, D_IN), x.dtype).at[:B].set(x)
    else:
        xp = x

    (w1, b1), (w2, b2), (w3, b3), (w4, b4) = prepped_params

    grid = (Bp // TB,)
    x_spec = pl.BlockSpec((TB, D_IN), lambda i: (i, 0))
    w1_spec = pl.BlockSpec((D_IN, PAD), lambda i: (0, 0))   # VMEM-resident
    w_mid_spec = pl.BlockSpec((PAD, PAD), lambda i: (0, 0))
    w4_spec = pl.BlockSpec((PAD, D_OUT), lambda i: (0, 0))
    b_wide_spec = pl.BlockSpec((1, PAD), lambda i: (0, 0))
    b4_spec = pl.BlockSpec((1, D_OUT), lambda i: (0, 0))
    o_spec = pl.BlockSpec((TB, D_OUT), lambda i: (i, 0))

    flops = 2 * Bp * (D_IN * PAD + PAD * PAD + PAD * PAD + PAD * D_OUT)
    bytes_accessed = (Bp * D_IN * 4                      # x (f32)
                      + Bp * D_OUT * 4                   # out (f32)
                      + (D_IN * PAD + 2 * PAD * PAD + PAD * D_OUT) * 2  # weights bf16
                      + (3 * PAD + D_OUT) * 4)           # biases f32

    out = pl.pallas_call(
        ff_kernel,
        out_shape=jax.ShapeDtypeStruct((Bp, D_OUT), jnp.float32),
        grid=grid,
        in_specs=[x_spec,
                  w1_spec, b_wide_spec,
                  w_mid_spec, b_wide_spec,
                  w_mid_spec, b_wide_spec,
                  w4_spec, b4_spec],
        out_specs=o_spec,
        compiler_params=pltpu.CompilerParams(
            dimension_semantics=("parallel",)),
        cost_estimate=pl.CostEstimate(flops=flops, transcendentals=0,
                                      bytes_accessed=bytes_accessed),
    )(xp, w1, b1, w2, b2, w3, b3, w4, b4)

    return out[:B] if Bp != B else out


def init_params(key):
    """Deterministic init mimicking torch.nn.Linear default (U[-1/sqrt(in), 1/sqrt(in)])."""
    dims = [(16, 32), (32, 64), (64, 32), (32, 16)]
    params = []
    for (fan_in, fan_out) in dims:
        key, kw, kb = jax.random.split(key, 3)
        bound = 1.0 / jnp.sqrt(fan_in)
        w = jax.random.uniform(kw, (fan_in, fan_out), jnp.float32, -bound, bound)
        b = jax.random.uniform(kb, (1, fan_out), jnp.float32, -bound, bound)
        params.append((w, b))
    return params


def ff_reference(x, params):
    """Pure-JAX reference matching kernel numerics: bf16 MXU operands, f32 accumulation.

    Note: like the PyTorch module, ReLU IS applied after the final (fc4) layer.
    """
    h = x
    for (w, b) in params:
        acc = jnp.dot(h.astype(jnp.bfloat16), w.astype(jnp.bfloat16),
                      preferred_element_type=jnp.float32)
        h = jnp.maximum(acc + b, 0.0)
    return h


def ff_reference_f32(x, params):
    """Full-f32 reference (PyTorch numerics) for a loose sanity check."""
    h = x
    for (w, b) in params:
        h = jnp.maximum(jnp.dot(h, w) + b, 0.0)
    return h


if __name__ == "__main__":
    key = jax.random.PRNGKey(0)
    key, kx = jax.random.split(key)

    B = 8
    x = jax.random.normal(kx, (B, 16), jnp.float32)
    params = init_params(key)
    prepped = prepare_params(params)      # one-time param prep (hoisted)

    out = ff_forward(x, prepped)
    out = jax.block_until_ready(out)

    ref_bf16 = ff_reference(x, params)
    ref_f32 = ff_reference_f32(x, params)
    assert out.shape == (B, 16), out.shape
    assert jnp.allclose(out, ref_bf16, atol=1e-3, rtol=1e-3), "mismatch vs bf16-matched reference"
    assert jnp.allclose(out, ref_f32, atol=5e-2, rtol=5e-2), "mismatch vs f32 reference"

    print("KERNEL_OK")
</pallas_src>

<mosaic_0001>
module attributes {stable_mosaic.version = 11 : i64} {
  func.func @ff_kernel(%arg0: i32, %arg1: memref<16x16xf32, #tpu.memory_space<vmem>>, %arg2: memref<16x128xbf16, #tpu.memory_space<vmem>>, %arg3: memref<1x128xf32, #tpu.memory_space<vmem>>, %arg4: memref<128x128xbf16, #tpu.memory_space<vmem>>, %arg5: memref<1x128xf32, #tpu.memory_space<vmem>>, %arg6: memref<128x128xbf16, #tpu.memory_space<vmem>>, %arg7: memref<1x128xf32, #tpu.memory_space<vmem>>, %arg8: memref<128x16xbf16, #tpu.memory_space<vmem>>, %arg9: memref<1x16xf32, #tpu.memory_space<vmem>>, %arg10: memref<16x16xf32, #tpu.memory_space<vmem>>) attributes {dimension_semantics = [#tpu.dimension_semantics<parallel>], iteration_bounds = array<i64: 1>, scalar_prefetch = 0 : i64, scratch_operands = 0 : i64, tpu.core_type = #tpu.core_type<tc>, window_params = [{transform_indices = @transform_0, window_bounds = array<i64: 16, 16>}, {pipeline_mode = #tpu.pipeline_mode<synchronous>, transform_indices = @transform_1, window_bounds = array<i64: 16, 128>}, {pipeline_mode = #tpu.pipeline_mode<synchronous>, transform_indices = @transform_2, window_bounds = array<i64: 1, 128>}, {pipeline_mode = #tpu.pipeline_mode<synchronous>, transform_indices = @transform_3, window_bounds = array<i64: 128, 128>}, {pipeline_mode = #tpu.pipeline_mode<synchronous>, transform_indices = @transform_4, window_bounds = array<i64: 1, 128>}, {pipeline_mode = #tpu.pipeline_mode<synchronous>, transform_indices = @transform_5, window_bounds = array<i64: 128, 128>}, {pipeline_mode = #tpu.pipeline_mode<synchronous>, transform_indices = @transform_6, window_bounds = array<i64: 1, 128>}, {pipeline_mode = #tpu.pipeline_mode<synchronous>, transform_indices = @transform_7, window_bounds = array<i64: 128, 16>}, {pipeline_mode = #tpu.pipeline_mode<synchronous>, transform_indices = @transform_8, window_bounds = array<i64: 1, 16>}, {transform_indices = @transform_9, window_bounds = array<i64: 16, 16>}]} {
    %c0 = arith.constant 0 : index
    %c0_0 = arith.constant 0 : index
    %0 = vector.load %arg1[%c0, %c0_0] : memref<16x16xf32, #tpu.memory_space<vmem>>, vector<16x16xf32>
    %1 = arith.truncf %0 : vector<16x16xf32> to vector<16x16xbf16>
    %c0_1 = arith.constant 0 : index
    %c0_2 = arith.constant 0 : index
    %2 = vector.load %arg2[%c0_1, %c0_2] : memref<16x128xbf16, #tpu.memory_space<vmem>>, vector<16x128xbf16>
    %cst = arith.constant dense<0.000000e+00> : vector<16x128xf32>
    %3 = tpu.matmul %1, %2, %cst {dimension_numbers = #tpu.dot_dimension_numbers<[1], [0], [0], [1], [0, 0, 1, 1], [], []>} : vector<16x16xbf16>, vector<16x128xbf16>, vector<16x128xf32> -> vector<16x128xf32>
    %c0_3 = arith.constant 0 : index
    %c0_4 = arith.constant 0 : index
    %4 = vector.load %arg3[%c0_3, %c0_4] : memref<1x128xf32, #tpu.memory_space<vmem>>, vector<1x128xf32>
    %5 = vector.broadcast %4 : vector<1x128xf32> to vector<16x128xf32>
    %6 = arith.addf %3, %5 : vector<16x128xf32>
    %cst_5 = arith.constant 0.000000e+00 : f32
    %7 = vector.broadcast %cst_5 : f32 to vector<16x128xf32>
    %8 = arith.maximumf %6, %7 : vector<16x128xf32>
    %9 = arith.truncf %8 : vector<16x128xf32> to vector<16x128xbf16>
    %c0_6 = arith.constant 0 : index
    %c0_7 = arith.constant 0 : index
    %10 = vector.load %arg4[%c0_6, %c0_7] : memref<128x128xbf16, #tpu.memory_space<vmem>>, vector<128x128xbf16>
    %cst_8 = arith.constant dense<0.000000e+00> : vector<16x128xf32>
    %11 = tpu.matmul %9, %10, %cst_8 {dimension_numbers = #tpu.dot_dimension_numbers<[1], [0], [0], [1], [0, 0, 1, 1], [], []>} : vector<16x128xbf16>, vector<128x128xbf16>, vector<16x128xf32> -> vector<16x128xf32>
    %c0_9 = arith.constant 0 : index
    %c0_10 = arith.constant 0 : index
    %12 = vector.load %arg5[%c0_9, %c0_10] : memref<1x128xf32, #tpu.memory_space<vmem>>, vector<1x128xf32>
    %13 = vector.broadcast %12 : vector<1x128xf32> to vector<16x128xf32>
    %14 = arith.addf %11, %13 : vector<16x128xf32>
    %cst_11 = arith.constant 0.000000e+00 : f32
    %15 = vector.broadcast %cst_11 : f32 to vector<16x128xf32>
    %16 = arith.maximumf %14, %15 : vector<16x128xf32>
    %17 = arith.truncf %16 : vector<16x128xf32> to vector<16x128xbf16>
    %c0_12 = arith.constant 0 : index
    %c0_13 = arith.constant 0 : index
    %18 = vector.load %arg6[%c0_12, %c0_13] : memref<128x128xbf16, #tpu.memory_space<vmem>>, vector<128x128xbf16>
    %cst_14 = arith.constant dense<0.000000e+00> : vector<16x128xf32>
    %19 = tpu.matmul %17, %18, %cst_14 {dimension_numbers = #tpu.dot_dimension_numbers<[1], [0], [0], [1], [0, 0, 1, 1], [], []>} : vector<16x128xbf16>, vector<128x128xbf16>, vector<16x128xf32> -> vector<16x128xf32>
    %c0_15 = arith.constant 0 : index
    %c0_16 = arith.constant 0 : index
    %20 = vector.load %arg7[%c0_15, %c0_16] : memref<1x128xf32, #tpu.memory_space<vmem>>, vector<1x128xf32>
    %21 = vector.broadcast %20 : vector<1x128xf32> to vector<16x128xf32>
    %22 = arith.addf %19, %21 : vector<16x128xf32>
    %cst_17 = arith.constant 0.000000e+00 : f32
    %23 = vector.broadcast %cst_17 : f32 to vector<16x128xf32>
    %24 = arith.maximumf %22, %23 : vector<16x128xf32>
    %25 = arith.truncf %24 : vector<16x128xf32> to vector<16x128xbf16>
    %c0_18 = arith.constant 0 : index
    %c0_19 = arith.constant 0 : index
    %26 = vector.load %arg8[%c0_18, %c0_19] : memref<128x16xbf16, #tpu.memory_space<vmem>>, vector<128x16xbf16>
    %cst_20 = arith.constant dense<0.000000e+00> : vector<16x16xf32>
    %27 = tpu.matmul %25, %26, %cst_20 {dimension_numbers = #tpu.dot_dimension_numbers<[1], [0], [0], [1], [0, 0, 1, 1], [], []>} : vector<16x128xbf16>, vector<128x16xbf16>, vector<16x16xf32> -> vector<16x16xf32>
    %c0_21 = arith.constant 0 : index
    %c0_22 = arith.constant 0 : index
    %28 = vector.load %arg9[%c0_21, %c0_22] : memref<1x16xf32, #tpu.memory_space<vmem>>, vector<1x16xf32>
    %29 = vector.broadcast %28 : vector<1x16xf32> to vector<16x16xf32>
    %30 = arith.addf %27, %29 : vector<16x16xf32>
    %cst_23 = arith.constant 0.000000e+00 : f32
    %31 = vector.broadcast %cst_23 : f32 to vector<16x16xf32>
    %32 = arith.maximumf %30, %31 : vector<16x16xf32>
    %c0_24 = arith.constant 0 : index
    %c0_25 = arith.constant 0 : index
    %33 = vector.load %arg10[%c0_24, %c0_25] : memref<16x16xf32, #tpu.memory_space<vmem>>, vector<16x16xf32>
    tpu.vector_store %arg10[%c0_24, %c0_25], %32 {strides = array<i32>} : memref<16x16xf32, #tpu.memory_space<vmem>>, vector<16x16xf32>,
    return
  }
  func.func @transform_0(%arg0: i32) -> (i32, i32) {
    %c0_i32 = arith.constant 0 : i32
    %c0_i32_0 = arith.constant 0 : i32
    return %arg0, %c0_i32 : i32, i32
  }
  func.func @transform_1(%arg0: i32) -> (i32, i32) {
    %c0_i32 = arith.constant 0 : i32
    %c0_i32_0 = arith.constant 0 : i32
    %c0_i32_1 = arith.constant 0 : i32
    return %c0_i32, %c0_i32_0 : i32, i32
  }
  func.func @transform_2(%arg0: i32) -> (i32, i32) {
    %c0_i32 = arith.constant 0 : i32
    %c0_i32_0 = arith.constant 0 : i32
    %c0_i32_1 = arith.constant 0 : i32
    return %c0_i32, %c0_i32_0 : i32, i32
  }
  func.func @transform_3(%arg0: i32) -> (i32, i32) {
    %c0_i32 = arith.constant 0 : i32
    %c0_i32_0 = arith.constant 0 : i32
    %c0_i32_1 = arith.constant 0 : i32
    return %c0_i32, %c0_i32_0 : i32, i32
  }
  func.func @transform_4(%arg0: i32) -> (i32, i32) {
    %c0_i32 = arith.constant 0 : i32
    %c0_i32_0 = arith.constant 0 : i32
    %c0_i32_1 = arith.constant 0 : i32
    return %c0_i32, %c0_i32_0 : i32, i32
  }
  func.func @transform_5(%arg0: i32) -> (i32, i32) {
    %c0_i32 = arith.constant 0 : i32
    %c0_i32_0 = arith.constant 0 : i32
    %c0_i32_1 = arith.constant 0 : i32
    return %c0_i32, %c0_i32_0 : i32, i32
  }
  func.func @transform_6(%arg0: i32) -> (i32, i32) {
    %c0_i32 = arith.constant 0 : i32
    %c0_i32_0 = arith.constant 0 : i32
    %c0_i32_1 = arith.constant 0 : i32
    return %c0_i32, %c0_i32_0 : i32, i32
  }
  func.func @transform_7(%arg0: i32) -> (i32, i32) {
    %c0_i32 = arith.constant 0 : i32
    %c0_i32_0 = arith.constant 0 : i32
    %c0_i32_1 = arith.constant 0 : i32
    return %c0_i32, %c0_i32_0 : i32, i32
  }
  func.func @transform_8(%arg0: i32) -> (i32, i32) {
    %c0_i32 = arith.constant 0 : i32
    %c0_i32_0 = arith.constant 0 : i32
    %c0_i32_1 = arith.constant 0 : i32
    return %c0_i32, %c0_i32_0 : i32, i32
  }
  func.func @transform_9(%arg0: i32) -> (i32, i32) {
    %c0_i32 = arith.constant 0 : i32
    %c0_i32_0 = arith.constant 0 : i32
    return %arg0, %c0_i32 : i32, i32
  }
}

</mosaic_0001>

<bundles_post_ra>
// kernel: tpu_custom_call.1
= control target key start
LH: loop header
LB: loop body
LE: loop exit
PB: predicated region body
PF: predicated region fallthrough
CT: control target
= control target key end

     0   :  { %14 = vsyncpa [#allocation3], 0  ;;  %s890_s0 = inlined_call_operand.hbm [shape: f32[16,16], index: 0, kind: input, shape index: {}]   ;;  %s891_s1 = inlined_call_operand.vmem [shape: bf16[16,128], index: 1, kind: input, shape index: {}]   ;;  %s892_s2 = inlined_call_operand.vmem [shape: f32[1,128], index: 2, kind: input, shape index: {}]   ;;  %s893_s3 = inlined_call_operand.vmem [shape: bf16[128,128], index: 3, kind: input, shape index: {}]   ;;  %s894_s4 = inlined_call_operand.vmem [shape: f32[1,128], index: 4, kind: input, shape index: {}]   ;;  %s895_s5 = inlined_call_operand.hbm [shape: bf16[128,128], index: 5, kind: input, shape index: {}]   ;;  %s896_s6 = inlined_call_operand.vmem [shape: f32[1,128], index: 6, kind: input, shape index: {}]   ;;  %s897_s7 = inlined_call_operand.vmem [shape: bf16[128,16], index: 7, kind: input, shape index: {}]   ;;  %s898_s8 = inlined_call_operand.vmem [shape: f32[1,16], index: 8, kind: input, shape index: {}]   ;;  %s899_s9 = inlined_call_operand.hbm [shape: f32[16,16], index: 9, kind: output, shape index: {}]  }
   0x1   :  { %15 = vsyncpa [#allocation6], 0 }
   0x2   :  { %16 = vsyncpa [#allocation4], 0  ;;  %s717_s30 = smov [#allocation2]  }
   0x3   :  { %s22_s10 = sshll.u32 %s717_s30, 4  ;;  %s23_s10 = int_to_ptr.vmem [resolvable:$true] %s22_s10 }
   0x4   :  { %s659_s11 = scalar_lea.vmem %s23_s10, 256  ;;  %p664_p1 = scmp.lt.s32.totalorder %s23_s10, %s23_s10 }
   0x5   :  { %p660_p0 = scmp.ne.s32.totalorder %s23_s10, %s659_s11  ;;  %p665_p2 = scmp.lt.s32.totalorder %s659_s11, %s659_s11 }
   0x7   :  { %p666_p3 = por %p665_p2, %p664_p1 }
   0x9   :  { %p667_p4 = pnand %p666_p3, %p660_p0 }
   0xb   :  { %670 = shalt.err (!%p667_p4)
}
   0xc   :  { %s718_s12 = smov 128   ;;  %s719_s13 = smov 8  }
   0xd   :  { %28 = dma.hbm_to_vmem [thread:$0]  %s890_s0, 256, %s23_s10, [#allocation3], %s718_s12, %s718_s12, %s719_s13  }
   0xe   :  { %s720_s16 = smov [#allocation5]  }
   0xf   :  { %s42_s17 = sshll.u32 %s720_s16, 4  ;;  %s43_s17 = int_to_ptr.vmem [resolvable:$true] %s42_s17 }
  0x10   :  { %s679_s18 = scalar_lea.vmem %s43_s17, 1024  ;;  %p684_p6 = scmp.lt.s32.totalorder %s43_s17, %s43_s17 }
  0x11   :  { %p680_p5 = scmp.ne.s32.totalorder %s43_s17, %s679_s18  ;;  %p685_p7 = scmp.lt.s32.totalorder %s679_s18, %s679_s18 }
  0x13   :  { %p686_p8 = por %p685_p7, %p684_p6 }
  0x15   :  { %p687_p9 = pnand %p686_p8, %p680_p5 }
  0x17   :  { %690 = shalt.err (!%p687_p9)
}
  0x18   :  { %s721_s19 = smov 64   ;;  %s722_s20 = smov 4  }
  0x19   :  { %48 = dma.hbm_to_vmem [thread:$0]  %s895_s5, 1024, %s43_s17, [#allocation6], %s721_s19, %s721_s19, %s722_s20  }
  0x1a   :  { %711 = dma.done.wait [#allocation3], 256  }
  0x1b   :  { %712 = vsyncadd [#allocation3], 4294967040 }
  0x1c   :  { %713 = dma.done.wait [#allocation6], 1024  }
  0x1d   :  { %714 = vsyncadd [#allocation6], 4294966272  ;;  %v723_v0 = vmov 0.0   ;;  %vm724_vm0 = vmmov 0   ;;  %v626_v1 = vld [vmem:[%s891_s1] sm:$0xff]   ;;  %v63_v3 = vld [vmem:[#allocation2 + $0x8] sm:$0xff] }
  0x1e   :  { %551 = vmatprep.subr.bf16.mxu0 %v723_v0  ;;  %553 = vmatprep.mubr.msk.bf16.mxu0 %vm724_vm0, %v723_v0  ;;  %v62_v2 = vld [vmem:[#allocation2] sm:$0xff]  ;;  %vm80_vm1 = vcmask 130048   ;;  %v627_v5 = vld [vmem:[%s893_s3 + $0x38] sm:$0xff]   ;;  %v628_v6 = vld [vmem:[%s893_s3 + $0x30] sm:$0xff]  }
  0x1f   :  { %557 = vmatprep.subr.bf16.mxu1 %v723_v0  ;;  %573 = vmatprep.mubr.msk.bf16.mxu1 %vm724_vm0, %v723_v0  ;;  %v64_v4 = vpack.c.bf16 %v63_v3, %v62_v2  ;;  %v629_v7 = vld [vmem:[%s893_s3 + $0x28] sm:$0xff]   ;;  %v630_v8 = vld [vmem:[%s893_s3 + $0x20] sm:$0xff]   ;;  %v631_v9 = vld [vmem:[%s893_s3 + $0x18] sm:$0xff]  }
  0x20   :  { %552 = vmatpush3.bf16.msra.mxu0 %v626_v1  ;;  %558 = vmatpush3.bf16.msra.mxu1 %v627_v5  ;;  %v632_v10 = vld [vmem:[%s893_s3 + $0x10] sm:$0xff]   ;;  %v633_v11 = vld [vmem:[%s893_s3 + $0x8] sm:$0xff]   ;;  %v634_v12 = vld [vmem:[%s893_s3] sm:$0xff]  }
  0x21   :  { %577 = vmatprep.subr.bf16.mxu0 %v723_v0  ;;  %559 = vmatprep.subr.bf16.mxu1 %v723_v0  ;;  %v635_v13 = vld [vmem:[#allocation5 + $0x38] sm:$0xff]   ;;  %v636_v14 = vld [vmem:[#allocation5 + $0x30] sm:$0xff]   ;;  %v637_v15 = vld [vmem:[#allocation5 + $0x28] sm:$0xff]  }
  0x22   :  { %v638_v16 = vld [vmem:[#allocation5 + $0x20] sm:$0xff]   ;;  %v639_v17 = vld [vmem:[#allocation5 + $0x18] sm:$0xff]   ;;  %v492_v18 = vld [vmem:[%s892_s2] ss:$0 sm:$0xff] }
  0x23   :  { %554 = vmatmul.mubr.msk.bf16.vlgmr.msra.gmra.mxu0 %vm80_vm1, %v64_v4  ;;  %v640_v28 = vld [vmem:[#allocation5 + $0x10] sm:$0xff]   ;;  %v641_v29 = vld [vmem:[#allocation5 + $0x8] sm:$0xff]   ;;  %v642_v30 = vld [vmem:[#allocation5] sm:$0xff]  }
  0x24   :  { %593 = vmatprep.mubr.msk.bf16.mxu0 %vm724_vm0, %v723_v0  ;;  %560 = vmatpush3.bf16.msra.mxu1 %v628_v6  ;;  %v643_v31 = vld [vmem:[%s897_s7 + $0x38] sm:$0xff]   ;;  %v644_v32 = vld [vmem:[%s897_s7 + $0x30] sm:$0xff]   ;;  %v645_v33 = vld [vmem:[%s897_s7 + $0x28] sm:$0xff]  }
  0x25   :  { %561 = vmatprep.subr.bf16.mxu1 %v723_v0  ;;  %578 = vmatpush3.bf16.msra.mxu0 %v635_v13  ;;  %v646_v34 = vld [vmem:[%s897_s7 + $0x20] sm:$0xff]   ;;  %v647_v35 = vld [vmem:[%s897_s7 + $0x18] sm:$0xff]   ;;  %v648_v46 = vld [vmem:[%s897_s7 + $0x10] sm:$0xff]  }
  0x26   :  { %579 = vmatprep.subr.bf16.mxu0 %v723_v0  ;;  %v495_v36 = vld [vmem:[%s894_s4] ss:$0 sm:$0xff]  ;;  %v649_v47 = vld [vmem:[%s897_s7 + $0x8] sm:$0xff]  }
  0x27   :  { %v650_v48 = vld [vmem:[%s897_s7] sm:$0xff]  }
  0x28   :  { %562 = vmatpush3.bf16.msra.mxu1 %v629_v7  ;;  %v504_v49 = vld [vmem:[%s896_s6] ss:$0 sm:$0xff]  ;;  %s725_s6 = smov [#allocation7]  }
  0x29   :  { %563 = vmatprep.subr.bf16.mxu1 %v723_v0  ;;  %580 = vmatpush3.bf16.msra.mxu0 %v636_v14  ;;  %v513_v59 = vld [vmem:[%s898_s8] ss:$0 sm:$0xff]  ;;  %s479_s7 = sshll.u32 %s725_s6, 4  ;;  %s480_s7 = int_to_ptr.vmem [resolvable:$true] %s479_s7 }
  0x2a   :  { %581 = vmatprep.subr.bf16.mxu0 %v723_v0  ;;  %s691_s18 = scalar_lea.vmem %s480_s7, 256  ;;  %p696_p11 = scmp.lt.s32.totalorder %s480_s7, %s480_s7 }
  0x2b   :  { %p692_p10 = scmp.ne.s32.totalorder %s480_s7, %s691_s18  ;;  %p697_p12 = scmp.lt.s32.totalorder %s691_s18, %s691_s18 }
  0x2c   :  { %564 = vmatpush3.bf16.msra.mxu1 %v630_v8 }
  0x2d   :  { %565 = vmatprep.subr.bf16.mxu1 %v723_v0  ;;  %582 = vmatpush3.bf16.msra.mxu0 %v637_v15  ;;  %p698_p13 = por %p697_p12, %p696_p11 }
  0x2e   :  { %583 = vmatprep.subr.bf16.mxu0 %v723_v0 }
  0x2f   :  { %p699_p0 = pnand %p698_p13, %p692_p10 }
  0x30   :  { %566 = vmatpush3.bf16.msra.mxu1 %v631_v9 }
  0x31   :  { %567 = vmatprep.subr.bf16.mxu1 %v723_v0  ;;  %584 = vmatpush3.bf16.msra.mxu0 %v638_v16 }
  0x32   :  { %585 = vmatprep.subr.bf16.mxu0 %v723_v0 }
  0x34   :  { %568 = vmatpush3.bf16.msra.mxu1 %v632_v10 }
  0x35   :  { %569 = vmatprep.subr.bf16.mxu1 %v723_v0  ;;  %586 = vmatpush3.bf16.msra.mxu0 %v639_v17 }
  0x36   :  { %587 = vmatprep.subr.bf16.mxu0 %v723_v0 }
  0x38   :  { %570 = vmatpush3.bf16.msra.mxu1 %v633_v11 }
  0x39   :  { %571 = vmatprep.subr.bf16.mxu1 %v723_v0  ;;  %588 = vmatpush3.bf16.msra.mxu0 %v640_v28 }
  0x3a   :  { %589 = vmatprep.subr.bf16.mxu0 %v723_v0 }
  0x3c   :  { %572 = vmatpush3.bf16.msra.mxu1 %v634_v12 }
  0x3d   :  { %597 = vmatprep.subr.bf16.mxu1 %v723_v0  ;;  %590 = vmatpush3.bf16.msra.mxu0 %v641_v29 }
  0x3e   :  { %591 = vmatprep.subr.bf16.mxu0 %v723_v0 }
  0x41   :  { %592 = vmatpush3.bf16.msra.mxu0 %v642_v30 }
  0xe3   :  { %v118_v19 = vpop.f32.mrf.mxu0 }
  0xe4   :  { %v119_v21 = vadd.f32 %v492_v18, %v118_v19 }
  0xe5   :  { %v555_v20 = vpop.f32.mrf.mxu0 }
  0xe6   :  { %v125_v25 = vmax.f32 %v119_v21, 0.0 }
  0xe7   :  { %v121_v22 = vpop.f32.mrf.mxu0 }
  0xe8   :  { %v122_v23 = vadd.f32 %v492_v18, %v121_v22 }
  0xe9   :  { %v556_v24 = vpop.f32.mrf.mxu0 }
  0xea   :  { %v126_v26 = vmax.f32 %v122_v23, 0.0 }
  0xec   :  { %v127_v27 = vpack.c.bf16 %v126_v26, %v125_v25 }
  0xee   :  { %574 = vmatmul.mubr.bf16.vlgmr.msra.gmra.mxu1 %v127_v27 }
  0xef   :  { %613 = vmatprep.mubr.msk.bf16.mxu1 %vm724_vm0, %v723_v0  ;;  %598 = vmatpush3.bf16.msra.mxu1 %v643_v31 }
  0xf0   :  { %599 = vmatprep.subr.bf16.mxu1 %v723_v0 }
  0xf3   :  { %600 = vmatpush3.bf16.msra.mxu1 %v644_v32 }
  0xf4   :  { %601 = vmatprep.subr.bf16.mxu1 %v723_v0 }
  0xf7   :  { %602 = vmatpush3.bf16.msra.mxu1 %v645_v33 }
  0xf8   :  { %603 = vmatprep.subr.bf16.mxu1 %v723_v0 }
  0xfb   :  { %604 = vmatpush3.bf16.msra.mxu1 %v646_v34 }
  0xfc   :  { %605 = vmatprep.subr.bf16.mxu1 %v723_v0 }
  0xff   :  { %606 = vmatpush3.bf16.msra.mxu1 %v647_v35 }
 0x100   :  { %607 = vmatprep.subr.bf16.mxu1 %v723_v0 }
 0x103   :  { %608 = vmatpush3.bf16.msra.mxu1 %v648_v46 }
 0x104   :  { %609 = vmatprep.subr.bf16.mxu1 %v723_v0 }
 0x107   :  { %610 = vmatpush3.bf16.msra.mxu1 %v649_v47 }
 0x108   :  { %611 = vmatprep.subr.bf16.mxu1 %v723_v0 }
 0x10b   :  { %612 = vmatpush3.bf16.msra.mxu1 %v650_v48 }
 0x1ae   :  { %v233_v37 = vpop.f32.mrf.mxu1 }
 0x1af   :  { %v234_v39 = vadd.f32 %v495_v36, %v233_v37 }
 0x1b0   :  { %v575_v38 = vpop.f32.mrf.mxu1 }
 0x1b1   :  { %v240_v43 = vmax.f32 %v234_v39, 0.0 }
 0x1b2   :  { %v236_v40 = vpop.f32.mrf.mxu1 }
 0x1b3   :  { %v237_v41 = vadd.f32 %v495_v36, %v236_v40 }
 0x1b4   :  { %v576_v42 = vpop.f32.mrf.mxu1 }
 0x1b5   :  { %v241_v44 = vmax.f32 %v237_v41, 0.0 }
 0x1b7   :  { %v242_v45 = vpack.c.bf16 %v241_v44, %v240_v43 }
 0x1b9   :  { %594 = vmatmul.mubr.bf16.vlgmr.msra.gmra.mxu0 %v242_v45 }
 0x279   :  { %v348_v50 = vpop.f32.mrf.mxu0 }
 0x27a   :  { %v349_v52 = vadd.f32 %v504_v49, %v348_v50 }
 0x27b   :  { %v595_v51 = vpop.f32.mrf.mxu0 }
 0x27c   :  { %v355_v56 = vmax.f32 %v349_v52, 0.0 }
 0x27d   :  { %v351_v53 = vpop.f32.mrf.mxu0 }
 0x27e   :  { %v352_v54 = vadd.f32 %v504_v49, %v351_v53 }
 0x27f   :  { %v596_v55 = vpop.f32.mrf.mxu0 }
 0x280   :  { %v356_v57 = vmax.f32 %v352_v54, 0.0 }
 0x282   :  { %v357_v58 = vpack.c.bf16 %v356_v57, %v355_v56 }
 0x284   :  { %614 = vmatmul.mubr.bf16.vlgmr.msra.gmra.mxu1 %v357_v58 }
 0x344   :  { %v463_v60 = vpop.f32.mrf.mxu1 }
 0x345   :  { %v464_v61 = vadd.f32 %v513_v59, %v463_v60 }
 0x346   :  { %v615_v62 = vpop.f32.mrf.mxu1 }
 0x347   :  { %v470_v63 = vmax.f32 %v464_v61, 0.0 }
 0x348   :  { %v466_v0 = vpop.f32.mrf.mxu1 }
 0x349   :  { %472 = vst.msk [vmem:[#allocation7] sm:$0xff] %vm80_vm1, %v470_v63  ;;  %v467_v1 = vadd.f32 %v513_v59, %v466_v0 }
 0x34a   :  { %v616_v2 = vpop.f32.mrf.mxu1 }
 0x34b   :  { %v471_v3 = vmax.f32 %v467_v1, 0.0 }
 0x34d   :  { %473 = vst.msk [vmem:[#allocation7 + $0x8] sm:$0xff] %vm80_vm1, %v471_v3 }
 0x34e   :  { %702 = shalt.err (!%p699_p0)
}
 0x34f   :  { %485 = dma.vmem_to_hbm [thread:$0]  %s480_s7, 256, %s899_s9, [#allocation4], %s718_s12, %s718_s12, %s719_s13  }
 0x350   :  { %715 = dma.done.wait [#allocation4], 256  }
 0x351   :  { %716 = vsyncadd [#allocation4], 4294967040 }
 0x352   :  { %489 = vsyncpa [#allocation3], 1 }
 0x353   :  { %490 = vsyncpa [#allocation6], 1 }
 0x354   :  { %491 = vsyncpa [#allocation4], 1 }

</bundles_post_ra>
